<compile_context>
chip_gen: v5e
topology: v5e:2x2
jax: 0.10.0
libtpu: 0.0.40
codegen_flags: <defaults>
</compile_context>

<pallas_src>
import math

import jax
import jax.numpy as jnp
from jax.experimental import pallas as pl
from jax.experimental.pallas import tpu as pltpu


_GLOBAL_BUFFERS = {}


def get_global_buffers():
    return _GLOBAL_BUFFERS


def _cdiv(a, b):
    return -(-a // b)


def _round_up(a, b):
    return _cdiv(a, b) * b


_MIN_TR = 16        # packed-row granularity: multiple of 16 keeps bf16 (16,128) tiles legal
_ROW_FLOOR = 512    # never shrink a tile below this many packed rows just to add grid steps


def _plan_tiles(R: int, W: int, target_tile_bytes: int):
    """Choose (tr, Rp, n): packed rows per tile, padded packed-row total, grid steps."""
    # Rows per tile so the largest (fp32) output tile is ~target_tile_bytes.
    tr_bytes = max(_MIN_TR, (target_tile_bytes // (W * 4)) // _MIN_TR * _MIN_TR)
    # Keep >=4 grid steps on large builds (feed both v7x TensorCores) ...
    tr_cap = _round_up(_cdiv(R, 4), _MIN_TR)
    tr_full = min(tr_bytes, tr_cap)
    # ... but never below _ROW_FLOOR rows, where per-step overhead would dominate again.
    tr_full = max(tr_full, min(tr_bytes, _ROW_FLOOR), _MIN_TR)
    n = _cdiv(R, tr_full)
    tr = _round_up(_cdiv(R, n), _MIN_TR)   # re-balance ragged tail: padding < n*_MIN_TR rows
    return tr, n * tr, n


class RotaryEmbedding:
    """JAX/Pallas port of Megatron's RotaryEmbedding (forward pass)."""

    def __init__(self, kv_channels: int, rotary_percent: float,
                 seq_len_interpolation_factor: float = None,
                 seq_length: int = 8, rotary_interleave_repeat: bool = False,
                 cache_dtype=jnp.float32):
        dim = kv_channels
        if rotary_percent < 1.0:
            dim = int(dim * rotary_percent)
        self.dim = dim
        self.cache_seq_length = seq_length
        self.rotary_interleave_repeat = rotary_interleave_repeat
        self.seq_len_interpolation_factor = seq_len_interpolation_factor
        self.cache_dtype = cache_dtype   # args.fp16 / args.bf16 analogue for the sin/cos caches

        # inv_freq = 1 / 10000**(arange(0, dim, 2) / dim)   (float32)
        self.inv_freq = 1.0 / (10000.0 ** (jnp.arange(0, dim, 2, dtype=jnp.float32) / dim))

        # Fold the duplication (interleave-repeat vs. concat) into the frequency vector.
        if rotary_interleave_repeat:
            inv_freq_full = jnp.repeat(self.inv_freq, 2)                     # [f0,f0,f1,f1,...]
        else:
            inv_freq_full = jnp.concatenate([self.inv_freq, self.inv_freq])  # [f...,f...]
        # Fold the interpolation factor into the freqs: ((s+off)*c)*f == (s+off)*(c*f).
        # (fp32 re-association, ~2eps relative error; not bit-identical to Megatron.)
        scale = 1.0 if seq_len_interpolation_factor is None else 1.0 / float(seq_len_interpolation_factor)
        self.inv_freq_full_scaled = (inv_freq_full * jnp.float32(scale)).astype(jnp.float32)

        D = int(self.inv_freq_full_scaled.shape[0])
        # Lane-dense packing: smallest k with k*D a multiple of 128 -> every output store is a
        # full unmasked 128-lane vst, even for D = 32, 64, 96, 160, ...
        k = 128 // math.gcd(D, 128)
        self._D, self._k, self._W = D, k, k * D

        # Resident (1, W) frequency rows:
        #   fp[c] = inv_freq_full_scaled[c % D]
        #   cb[c] = (c // D) * fp[c]        (per-column extra sequence index * freq)
        fp_flat = jnp.tile(self.inv_freq_full_scaled, k)
        cb_flat = jnp.repeat(jnp.arange(k, dtype=jnp.float32), D) * fp_flat
        self._fp_row = fp_flat.reshape(1, self._W)
        self._cb_row = cb_flat.reshape(1, self._W)

        self._step_tables = {}   # tr -> step-invariant (tr, W) table
        self._calls = {}         # (tr, Rp, n, with_trig) -> jitted pallas_call

        # Mirror Megatron's __init__ caching: one fused kernel emits sinusoid_inp, sin, cos
        # (sin/cos ride otherwise-idle EUP slots; caches optionally stored half-width).
        ang, sin_t, cos_t = self._build_tables(self.cache_seq_length, 0, with_trig=True)
        _GLOBAL_BUFFERS['sinusoid_inp'] = ang
        _GLOBAL_BUFFERS['cached_sin'] = sin_t
        _GLOBAL_BUFFERS['cached_cos'] = cos_t

    # ---- kernel plumbing ---------------------------------------------------

    def _step_table(self, tr: int) -> jax.Array:
        """Step-invariant (tr, W) term T[r, c] = r*k*fp[c] + (c//D)*fp[c] (built once per tr)."""
        t = self._step_tables.get(tr)
        if t is None:
            r = jnp.arange(tr, dtype=jnp.float32)[:, None]
            t = r * (float(self._k) * self._fp_row) + self._cb_row
            self._step_tables[tr] = t
        return t

    def _get_call(self, tr: int, Rp: int, n: int, with_trig: bool):
        key = (tr, Rp, n, with_trig)
        fn = self._calls.get(key)
        if fn is not None:
            return fn

        W, k = self._W, self._k
        stride = tr * k                         # sequence rows covered per grid step
        cache_dtype = self.cache_dtype

        def kernel(offset_ref, fp_ref, t_ref, *out_refs):
            i = pl.program_id(0)
            # Sequence base of this tile; offset is a runtime SMEM scalar (no per-offset retrace).
            base = (i * stride + offset_ref[0]).astype(jnp.float32)
            # angle = T + base*fp : ~1 broadcast add per element (step-invariant part hoisted).
            ang = t_ref[...] + base * fp_ref[...]
            out_refs[0][...] = ang
            if with_trig:
                out_refs[1][...] = jnp.sin(ang).astype(cache_dtype)
                out_refs[2][...] = jnp.cos(ang).astype(cache_dtype)

        out_dtypes = (jnp.float32,) + ((cache_dtype, cache_dtype) if with_trig else ())
        out_shape = tuple(jax.ShapeDtypeStruct((Rp, W), dt) for dt in out_dtypes)
        out_specs = tuple(pl.BlockSpec((tr, W), lambda i, off: (i, 0)) for _ in out_dtypes)
        if not with_trig:
            out_shape, out_specs = out_shape[0], out_specs[0]

        # Explicit VMEM budget: resident T (x2 buffers for safety) + double-buffered outputs.
        t_bytes = tr * W * 4
        out_bytes = sum(tr * W * jnp.dtype(dt).itemsize for dt in out_dtypes)
        vmem_needed = 2 * t_bytes + 2 * out_bytes + 2 * (W * 4) + (1 << 20)
        vmem_limit = int(min(max(vmem_needed + (4 << 20), 32 << 20), 56 << 20))

        fn = jax.jit(pl.pallas_call(
            kernel,
            out_shape=out_shape,
            grid_spec=pltpu.PrefetchScalarGridSpec(
                num_scalar_prefetch=1,                              # offset lives in SMEM
                grid=(n,),
                in_specs=[
                    pl.BlockSpec((1, W), lambda i, off: (0, 0)),    # freq row, stays resident
                    pl.BlockSpec((tr, W), lambda i, off: (0, 0)),   # step-invariant table, resident
                ],
                out_specs=out_specs,
            ),
            compiler_params=pltpu.CompilerParams(
                dimension_semantics=("parallel",),                  # shard grid across v7x TCs
                vmem_limit_bytes=vmem_limit,
            ),
        ))
        self._calls[key] = fn
        return fn

    def _build_tables(self, S: int, offset: int, *, with_trig: bool = False):
        assert S >= 1
        # Positions are generated in fp32; exactness is lost beyond ~2^24 sequence positions.
        assert S + offset < (1 << 24), "positions beyond 2^24 lose fp32 exactness"
        D, k, W = self._D, self._k, self._W
        R = _cdiv(S, k)                                      # packed rows needed
        target = (2 << 20) if with_trig else (4 << 20)       # bytes / largest output tile
        tr, Rp, n = _plan_tiles(R, W, target)

        fn = self._get_call(tr, Rp, n, with_trig)
        offset_arr = jnp.asarray([offset], dtype=jnp.int32)
        outs = fn(offset_arr, self._fp_row, self._step_table(tr))
        if not with_trig:
            outs = (outs,)

        def unpack(x):
            x = x.reshape(Rp * k, D)                 # (Rp, k*D) row-major -> (Rp*k, D): free reshape
            return x if Rp * k == S else x[:S]       # slice (copy) only when padding exists

        outs = tuple(unpack(o) for o in outs)
        return outs if with_trig else outs[0]

    # ---- forward -------------------------------------------------------------

    def __call__(self, max_seq_len: int, offset: int = 0) -> jax.Array:
        if max_seq_len == self.cache_seq_length and offset == 0:
            emb = _GLOBAL_BUFFERS['sinusoid_inp']                  # cached path
        else:
            emb = self._build_tables(max_seq_len, offset)
        # TODO(synk): context-parallel slicing (get_pos_emb_on_this_cp_rank) omitted; assumes cp_size == 1.
        return emb[:, None, None, :]                               # (S, 1, 1, D)


def _reference(rope: RotaryEmbedding, S: int, offset: int) -> jax.Array:
    """Pure-JAX reference mirroring the PyTorch math exactly."""
    seq = jnp.arange(S, dtype=jnp.float32) + float(offset)
    if rope.seq_len_interpolation_factor is not None:
        seq = seq * (1.0 / float(rope.seq_len_interpolation_factor))
    freqs = jnp.einsum("i,j->ij", seq, rope.inv_freq)
    if rope.rotary_interleave_repeat:
        emb = jnp.repeat(freqs, 2, axis=-1)
    else:
        emb = jnp.concatenate([freqs, freqs], axis=-1)
    return emb[:, None, None, :]


if __name__ == "__main__":
    key = jax.random.PRNGKey(0)  # forward takes no tensor inputs; key kept for convention
    del key

    kv_channels = 32
    seq_len = 8

    rope = RotaryEmbedding(kv_channels, 1.0,
                           seq_len_interpolation_factor=None,
                           seq_length=seq_len,
                           rotary_interleave_repeat=False)

    # Cached path (max_seq_len == cache_seq_length, offset == 0).
    emb = jax.block_until_ready(rope(seq_len, 0))
    emb_ref = _reference(rope, seq_len, 0)
    assert emb.shape == (seq_len, 1, 1, kv_channels), emb.shape
    assert emb.dtype == jnp.float32
    assert jnp.allclose(emb, emb_ref, atol=1e-5, rtol=1e-5)

    # Fused sin/cos cache buffers produced in __init__ (fp32 default).
    bufs = get_global_buffers()
    ang2d = emb_ref[:, 0, 0, :]
    assert bufs['cached_sin'].dtype == jnp.float32
    assert jnp.allclose(bufs['cached_sin'], jnp.sin(ang2d), atol=1e-4)
    assert jnp.allclose(bufs['cached_cos'], jnp.cos(ang2d), atol=1e-4)

    # Non-cached path: ragged length (not a multiple of the lane-packing factor) + offset.
    emb2 = jax.block_until_ready(rope(13, 5))
    ref2 = _reference(rope, 13, 5)
    assert emb2.shape == (13, 1, 1, kv_channels)
    assert jnp.allclose(emb2, ref2, atol=1e-5, rtol=1e-5)

    # Same shape, different runtime offset: reuses the same jitted kernel (no retrace).
    emb2b = jax.block_until_ready(rope(13, 7))
    assert jnp.allclose(emb2b, _reference(rope, 13, 7), atol=1e-5, rtol=1e-5)

    # Medium non-cached build: multi-step grid + ragged tail re-balancing + wrapper slice.
    S_med = 2500
    emb_med = jax.block_until_ready(rope(S_med, 17))
    ref_med = _reference(rope, S_med, 17)
    assert emb_med.shape == (S_med, 1, 1, kv_channels)
    assert jnp.allclose(emb_med, ref_med, atol=1e-5, rtol=1e-5)

    # Interleave-repeat variant with the interpolation factor folded into the freqs.
    rope_il = RotaryEmbedding(kv_channels, 1.0,
                              seq_len_interpolation_factor=2.0,
                              seq_length=seq_len,
                              rotary_interleave_repeat=True)
    emb3 = jax.block_until_ready(rope_il(11, 2))
    ref3 = _reference(rope_il, 11, 2)
    assert emb3.shape == (11, 1, 1, kv_channels)
    assert jnp.allclose(emb3, ref3, atol=1e-5, rtol=1e-5)

    # bf16 sin/cos caches (args.bf16 analogue): halves cache HBM traffic and footprint.
    rope_bf = RotaryEmbedding(kv_channels, 1.0,
                              seq_len_interpolation_factor=None,
                              seq_length=seq_len,
                              rotary_interleave_repeat=False,
                              cache_dtype=jnp.bfloat16)
    bufs_bf = get_global_buffers()
    assert bufs_bf['cached_sin'].dtype == jnp.bfloat16
    assert bufs_bf['cached_cos'].dtype == jnp.bfloat16
    assert jnp.allclose(bufs_bf['cached_sin'].astype(jnp.float32), jnp.sin(ang2d), atol=4e-3)
    assert jnp.allclose(bufs_bf['cached_cos'].astype(jnp.float32), jnp.cos(ang2d), atol=4e-3)

    print("KERNEL_OK")
</pallas_src>

<mosaic_0001>
module attributes {stable_mosaic.version = 11 : i64} {
  func.func @kernel(%arg0: i32, %arg1: memref<1xi32, #tpu.memory_space<smem>>, %arg2: memref<1x128xf32, #tpu.memory_space<vmem>>, %arg3: memref<16x128xf32, #tpu.memory_space<vmem>>, %arg4: memref<16x128xf32, #tpu.memory_space<vmem>>, %arg5: memref<16x128xf32, #tpu.memory_space<vmem>>, %arg6: memref<16x128xf32, #tpu.memory_space<vmem>>) attributes {dimension_semantics = [#tpu.dimension_semantics<parallel>], iteration_bounds = array<i64: 1>, scalar_prefetch = 1 : i64, scratch_operands = 0 : i64, tpu.core_type = #tpu.core_type<tc>, window_params = [{pipeline_mode = #tpu.pipeline_mode<synchronous>, transform_indices = @transform_0, window_bounds = array<i64: 1, 128>}, {pipeline_mode = #tpu.pipeline_mode<synchronous>, transform_indices = @transform_1, window_bounds = array<i64: 16, 128>}, {transform_indices = @transform_2, window_bounds = array<i64: 16, 128>}, {transform_indices = @transform_3, window_bounds = array<i64: 16, 128>}, {transform_indices = @transform_4, window_bounds = array<i64: 16, 128>}]} {
    %c64_i32 = arith.constant 64 : i32
    %0 = arith.muli %arg0, %c64_i32 : i32
    %c0 = arith.constant 0 : index
    %1 = memref.load %arg1[%c0] : memref<1xi32, #tpu.memory_space<smem>>
    %2 = arith.addi %0, %1 : i32
    %3 = arith.sitofp %2 : i32 to f32
    %c0_0 = arith.constant 0 : index
    %c0_1 = arith.constant 0 : index
    %4 = vector.load %arg3[%c0_0, %c0_1] : memref<16x128xf32, #tpu.memory_space<vmem>>, vector<16x128xf32>
    %c0_2 = arith.constant 0 : index
    %c0_3 = arith.constant 0 : index
    %5 = vector.load %arg2[%c0_2, %c0_3] : memref<1x128xf32, #tpu.memory_space<vmem>>, vector<1x128xf32>
    %6 = vector.broadcast %3 : f32 to vector<1x128xf32>
    %7 = arith.mulf %6, %5 : vector<1x128xf32>
    %8 = vector.broadcast %7 : vector<1x128xf32> to vector<16x128xf32>
    %9 = arith.addf %4, %8 : vector<16x128xf32>
    %c0_4 = arith.constant 0 : index
    %c0_5 = arith.constant 0 : index
    %10 = vector.load %arg4[%c0_4, %c0_5] : memref<16x128xf32, #tpu.memory_space<vmem>>, vector<16x128xf32>
    tpu.vector_store %arg4[%c0_4, %c0_5], %9 {strides = array<i32>} : memref<16x128xf32, #tpu.memory_space<vmem>>, vector<16x128xf32>,
    %11 = math.sin %9 : vector<16x128xf32>
    %c0_6 = arith.constant 0 : index
    %c0_7 = arith.constant 0 : index
    %12 = vector.load %arg5[%c0_6, %c0_7] : memref<16x128xf32, #tpu.memory_space<vmem>>, vector<16x128xf32>
    tpu.vector_store %arg5[%c0_6, %c0_7], %11 {strides = array<i32>} : memref<16x128xf32, #tpu.memory_space<vmem>>, vector<16x128xf32>,
    %13 = math.cos %9 : vector<16x128xf32>
    %c0_8 = arith.constant 0 : index
    %c0_9 = arith.constant 0 : index
    %14 = vector.load %arg6[%c0_8, %c0_9] : memref<16x128xf32, #tpu.memory_space<vmem>>, vector<16x128xf32>
    tpu.vector_store %arg6[%c0_8, %c0_9], %13 {strides = array<i32>} : memref<16x128xf32, #tpu.memory_space<vmem>>, vector<16x128xf32>,
    return
  }
  func.func @transform_0(%arg0: i32, %arg1: memref<1xi32, #tpu.memory_space<smem>>) -> (i32, i32) {
    %c0_i32 = arith.constant 0 : i32
    %c0_i32_0 = arith.constant 0 : i32
    %c0_i32_1 = arith.constant 0 : i32
    return %c0_i32, %c0_i32_0 : i32, i32
  }
  func.func @transform_1(%arg0: i32, %arg1: memref<1xi32, #tpu.memory_space<smem>>) -> (i32, i32) {
    %c0_i32 = arith.constant 0 : i32
    %c0_i32_0 = arith.constant 0 : i32
    %c0_i32_1 = arith.constant 0 : i32
    return %c0_i32, %c0_i32_0 : i32, i32
  }
  func.func @transform_2(%arg0: i32, %arg1: memref<1xi32, #tpu.memory_space<smem>>) -> (i32, i32) {
    %c0_i32 = arith.constant 0 : i32
    %c0_i32_0 = arith.constant 0 : i32
    return %arg0, %c0_i32 : i32, i32
  }
  func.func @transform_3(%arg0: i32, %arg1: memref<1xi32, #tpu.memory_space<smem>>) -> (i32, i32) {
    %c0_i32 = arith.constant 0 : i32
    %c0_i32_0 = arith.constant 0 : i32
    return %arg0, %c0_i32 : i32, i32
  }
  func.func @transform_4(%arg0: i32, %arg1: memref<1xi32, #tpu.memory_space<smem>>) -> (i32, i32) {
    %c0_i32 = arith.constant 0 : i32
    %c0_i32_0 = arith.constant 0 : i32
    return %arg0, %c0_i32 : i32, i32
  }
}

</mosaic_0001>

<bundles_post_ra>
// kernel: tpu_custom_call.1
= control target key start
LH: loop header
LB: loop body
LE: loop exit
PB: predicated region body
PF: predicated region fallthrough
CT: control target
= control target key end

     0   :  { %12 = vsyncpa [#allocation5], 0  ;;  %s1098_s0 = inlined_call_operand.<no memory space> [shape: s32[1], index: 0, kind: input, shape index: {}]   ;;  %s1099_s1 = inlined_call_operand.vmem [shape: f32[1,128], index: 1, kind: input, shape index: {}]   ;;  %s1100_s2 = inlined_call_operand.hbm [shape: f32[16,128], index: 2, kind: input, shape index: {}]   ;;  %s1101_s3 = inlined_call_operand.hbm [shape: f32[16,128], index: 3, kind: output, shape index: {0}]   ;;  %s1102_s4 = inlined_call_operand.hbm [shape: f32[16,128], index: 4, kind: output, shape index: {1}]   ;;  %s1103_s5 = inlined_call_operand.hbm [shape: f32[16,128], index: 5, kind: output, shape index: {2}]  }
   0x1   :  { %13 = vsyncpa [#allocation6], 0 }
   0x2   :  { %14 = vsyncpa [#allocation9], 0  ;;  %s21_s20 = sshll.u32 %s1100_s2, 4  ;;  %s853_s21 = smov [#allocation4]   ;;  %s22_s20 = int_to_ptr.hbm [resolvable:$true] %s21_s20 }
   0x3   :  { %s23_s22 = sshll.u32 %s853_s21, 4  ;;  %s854_s23 = smov 128   ;;  %s24_s22 = int_to_ptr.vmem [resolvable:$true] %s23_s22 }
   0x4   :  { %s855_s24 = smov 8  }
   0x5   :  { %29 = dma.hbm_to_vmem [thread:$0]  %s22_s20, 256, %s24_s22, [#allocation5], %s854_s23, %s854_s23, %s855_s24  }
   0x6   :  { %847 = dma.done.wait [#allocation5], 256  }
   0x7   :  { %848 = vsyncadd [#allocation5], 4294967040  ;;  %s37_s27 = scvt.s32.f32 %s1098_s0  ;;  %v40_v1 = vld [vmem:[%s1099_s1] sm:$0x1]  ;;  %v39_v4 = vld [vmem:[#allocation4 + $0x8] sm:$0xff]  ;;  %s856_s2 = smov [#allocation7]  }
   0x8   :  { %v38_v3 = vld [vmem:[#allocation4] sm:$0xff]  ;;  %s676_s30 = sshll.u32 %s856_s2, 4  ;;  %s678_s8 = sshll.u32 %s1101_s3, 4  ;;  %v857_v29 = vmov 683565275   ;;  %s677_s30 = int_to_ptr.vmem [resolvable:$true] %s676_s30  ;;  %s679_s8 = int_to_ptr.hbm [resolvable:$true] %s678_s8 }
   0x9   :  { %v41_v0 = vstv %s37_s27  ;;  %v858_v31 = vmov 2475754826   ;;  %v859_v33 = vmov 2131351028   ;;  %v860_v35 = vmov 2102212464  }
   0xa   :  { %v42_v2 = vmul.f32 %v41_v0, %v40_v1  ;;  %v861_v37 = vmov 920167782   ;;  %v862_v46 = vmov 1326507024   ;;  %s864_s0 = smov [#allocation8]   ;;  %s691_s10 = sshll.u32 %s1102_s4, 4  ;;  %s692_s10 = int_to_ptr.hbm [resolvable:$true] %s691_s10 }
   0xb   :  { %s689_s1 = sshll.u32 %s864_s0, 4  ;;  %s865_s11 = smov [#allocation10]   ;;  %s690_s1 = int_to_ptr.vmem [resolvable:$true] %s689_s1 }
   0xc   :  { %v44_v5 = vperm.slane %v42_v2, 0  ;;  %s702_s12 = sshll.u32 %s865_s11, 4  ;;  %s704_s15 = sshll.u32 %s1103_s5, 4  ;;  %s703_s12 = int_to_ptr.vmem [resolvable:$true] %s702_s12  ;;  %s705_s15 = int_to_ptr.hbm [resolvable:$true] %s704_s15 }
   0xe   :  { %v911_v6 = vadd.f32 %v44_v5, %v38_v3  ;;  %v913_v7 = vadd.f32 %v44_v5, %v39_v4 }
  0x10   :  { %v50_v8 = vand.u32 2147483647, %v911_v6  ;;  %v53_v9 = vand.u32 2139095040, %v911_v6  ;;  %48 = vst [vmem:[#allocation7] sm:$0xff] %v911_v6  ;;  %v208_v10 = vand.u32 2139095040, %v913_v7 }
  0x11   :  { %v205_v11 = vand.u32 2147483647, %v913_v7  ;;  %49 = vst [vmem:[#allocation7 + $0x8] sm:$0xff] %v913_v7 }
  0x12   :  { %v54_v12 = vshrl.u32 %v53_v9, 23  ;;  %v57_v13 = vand.u32 8388607, %v50_v8  ;;  %v209_v14 = vshrl.u32 %v208_v10, 23  ;;  %684 = dma.vmem_to_hbm [thread:$0]  %s677_s30, 256, %s679_s8, [#allocation6], %s854_s23, %s854_s23, %s855_s24  }
  0x13   :  { %v212_v18 = vand.u32 8388607, %v205_v11 }
  0x14   :  { %v726_v15 = vadd.s32 4294967169, %v54_v12  ;;  %v729_v16 = vadd.s32 4294967169, %v209_v14  ;;  %v58_v17 = vor.u32 8388608, %v57_v13 }
  0x15   :  { %v213_v23 = vor.u32 8388608, %v212_v18 }
  0x16   :  { %v60_v19 = vadd.s32 1, %v726_v15  ;;  %v215_v20 = vadd.s32 1, %v729_v16  ;;  %v928_v22 = vshll.u32 %v58_v17, 8 }
  0x17   :  { %v938_v40 = vshll.u32 %v213_v23, 8 }
  0x18   :  { %vm61_vm0 = vcmp.gt.s32.totalorder %v60_v19, 0  ;;  %vm216_vm1 = vcmp.gt.s32.totalorder %v215_v20, 0  ;;  %v99_v39 = vand.u32 65535, %v928_v22  ;;  %v100_v44 = vshrl.u32 %v928_v22, 16 }
  0x19   :  { %v62_v21 = vsel %vm61_vm0, %v60_v19, 0  ;;  %v217_v24 = vsel %vm216_vm1, %v215_v20, 0 }
  0x1a   :  { %v64_v25 = vand.u32 31, %v62_v21  ;;  %v930_v26 = vshrl.u32 %v62_v21, 5  ;;  %v932_v27 = vand.u32 31, %v217_v24  ;;  %v956_v57 = vshrl.u32 %v217_v24, 5 }
  0x1c   :  { %v65_v28 = vsub.s32 32, %v64_v25  ;;  %v67_v30 = vshll.u32 %v857_v29, %v64_v25  ;;  %v70_v32 = vshll.u32 %v858_v31, %v64_v25  ;;  %v73_v34 = vshll.u32 %v859_v33, %v64_v25 }
  0x1d   :  { %v76_v36 = vshll.u32 %v860_v35, %v64_v25  ;;  %v79_v38 = vshll.u32 %v861_v37, %v64_v25  ;;  %vm82_vm2 = vcmp.lt.s32.totalorder %v930_v26, 1  ;;  %vm85_vm3 = vcmp.lt.s32.totalorder %v930_v26, 4 }
  0x1e   :  { %v68_v41 = vshrl.u32 %v858_v31, %v65_v28  ;;  %v71_v42 = vshrl.u32 %v859_v33, %v65_v28  ;;  %v74_v43 = vshrl.u32 %v860_v35, %v65_v28  ;;  %v77_v45 = vshrl.u32 %v861_v37, %v65_v28 }
  0x1f   :  { %v80_v47 = vshrl.u32 %v862_v46, %v65_v28  ;;  %v947_v51 = vsub.s32 32, %v932_v27  ;;  %v66_v52 = vshrl.u32 %v857_v29, %v65_v28  ;;  %vm84_vm4 = vcmp.lt.s32.totalorder %v930_v26, 3 }
  0x20   :  { %v69_v48 = vor.u32 %v68_v41, %v67_v30  ;;  %v72_v49 = vor.u32 %v71_v42, %v70_v32  ;;  %v75_v50 = vor.u32 %v74_v43, %v73_v34  ;;  %v78_v53 = vor.u32 %v77_v45, %v76_v36 }
  0x21   :  { %v81_v54 = vor.u32 %v80_v47, %v79_v38  ;;  %vm83_vm5 = vcmp.lt.s32.totalorder %v930_v26, 2  ;;  %v222_v60 = vshll.u32 %v857_v29, %v932_v27  ;;  %v225_v61 = vshll.u32 %v858_v31, %v932_v27 }
  0x22   :  { %v90_v55 = vsel %vm82_vm2, %v69_v48, %v72_v49  ;;  %v94_v56 = vsel %vm82_vm2, %v72_v49, %v75_v50  ;;  %v91_v58 = vsel %vm85_vm3, %v78_v53, 920167782  ;;  %v87_v62 = vsel %vm85_vm3, %v75_v50, 2102212464 }
  0x23   :  { %v95_v59 = vsel %vm85_vm3, %v81_v54, 1326507024  ;;  %v92_v63 = vsel %vm84_vm4, %v75_v50, %v91_v58  ;;  %v223_v1 = vshrl.u32 %v858_v31, %v947_v51  ;;  %v86_v2 = vsel %vm82_vm2, %v66_v52, %v69_v48 }
  0x24   :  { %v96_v0 = vsel %vm84_vm4, %v78_v53, %v95_v59  ;;  %v93_v3 = vsel %vm83_vm5, %v90_v55, %v92_v63  ;;  %v226_v5 = vshrl.u32 %v859_v33, %v947_v51  ;;  %v88_v14 = vsel %vm84_vm4, %v72_v49, %v87_v62 }
  0x25   :  { %v97_v4 = vsel %vm83_vm5, %v94_v56, %v96_v0  ;;  %v123_v12 = vand.u32 65535, %v93_v3  ;;  %v124_v13 = vshrl.u32 %v93_v3, 16  ;;  %v981_v15 = vor.u32 %v223_v1, %v222_v60 }
  0x26   :  { %v101_v9 = vand.u32 65535, %v97_v4  ;;  %v102_v10 = vshrl.u32 %v97_v4, 16  ;;  %v983_v16 = vor.u32 %v226_v5, %v225_v61  ;;  %v228_v17 = vshll.u32 %v859_v33, %v932_v27 }
  0x27   :  { %v229_v21 = vshrl.u32 %v860_v35, %v947_v51  ;;  %v125_v24 = vmul.u32 %v123_v12, %v99_v39  ;;  %v126_v25 = vmul.u32 %v124_v13, %v99_v39  ;;  %v127_v28 = vmul.u32 %v123_v12, %v100_v44 }
  0x28   :  { %v103_v18 = vmul.u32 %v101_v9, %v99_v39  ;;  %v104_v19 = vmul.u32 %v102_v10, %v99_v39  ;;  %v105_v20 = vmul.u32 %v101_v9, %v100_v44  ;;  %v106_v23 = vmul.u32 %v102_v10, %v100_v44 }
  0x29   :  { %v128_v34 = vmul.u32 %v124_v13, %v100_v44  ;;  %v129_v38 = vshll.u32 %v126_v25, 16  ;;  %v130_v41 = vshrl.u32 %v126_v25, 16  ;;  %v131_v42 = vshll.u32 %v127_v28, 16 }
  0x2a   :  { %v107_v30 = vshll.u32 %v104_v19, 16  ;;  %v108_v31 = vshrl.u32 %v104_v19, 16  ;;  %v109_v32 = vshll.u32 %v105_v20, 16  ;;  %v110_v36 = vshrl.u32 %v105_v20, 16 }
  0x2b   :  { %v132_v43 = vshrl.u32 %v127_v28, 16  ;;  %v231_v45 = vshll.u32 %v860_v35, %v932_v27  ;;  %v863_v47 = vmov 0   ;;  %vm133_vm7 = vc.u32 %v125_v24, %v129_v38 }
  0x2c   :  { %vm111_vm6 = vc.u32 %v103_v18, %v107_v30  ;;  %v113_v33 = vadd.s32 %v107_v30, %v103_v18  ;;  %v135_v39 = vadd.s32 %v129_v38, %v125_v24  ;;  %v232_v49 = vshrl.u32 %v861_v37, %v947_v51 }
  0x2d   :  { %v112_v48 = vsel %vm111_vm6, 1, %v863_v47  ;;  %v134_v44 = vsel %vm133_vm7, 1, %v863_v47  ;;  %v234_v52 = vshll.u32 %v861_v37, %v932_v27  ;;  %v230_v35 = vor.u32 %v229_v21, %v228_v17 }
  0x2e   :  { %v114_v50 = vadd.s32 %v112_v48, %v106_v23  ;;  %vm115_vm8 = vc.u32 %v113_v33, %v109_v32  ;;  %v136_v54 = vadd.s32 %v134_v44, %v128_v34  ;;  %vm137_vm9 = vc.u32 %v135_v39, %v131_v42 }
  0x2f   :  { %v116_v53 = vsel %vm115_vm8, 1, %v863_v47  ;;  %v138_v56 = vsel %vm137_vm9, 1, %v863_v47  ;;  %v233_v58 = vor.u32 %v232_v49, %v231_v45  ;;  %v235_v59 = vshrl.u32 %v862_v46, %v947_v51 }
  0x30   :  { %v118_v55 = vadd.s32 %v116_v53, %v114_v50  ;;  %v1000_v60 = vadd.s32 %v135_v39, %v131_v42  ;;  %v140_v61 = vadd.s32 %v138_v56, %v136_v54  ;;  %vm237_vm10 = vcmp.lt.s32.totalorder %v956_v57, 1 }
  0x31   :  { %vm239_vm11 = vcmp.lt.s32.totalorder %v956_v57, 3  ;;  %v236_v37 = vor.u32 %v235_v59, %v234_v52  ;;  %vm238_vm12 = vcmp.lt.s32.totalorder %v956_v57, 2  ;;  %vm240_vm13 = vcmp.lt.s32.totalorder %v956_v57, 4 }
  0x32   :  { %v119_v27 = vadd.s32 %v118_v55, %v108_v31  ;;  %v89_v62 = vsel %vm83_vm5, %v86_v2, %v88_v14  ;;  %v141_v63 = vadd.s32 %v140_v61, %v130_v41  ;;  %v245_v46 = vsel %vm237_vm10, %v981_v15, %v983_v16 }
  0x33   :  { %v246_v0 = vsel %vm240_vm13, %v233_v58, 920167782  ;;  %v249_v4 = vsel %vm237_vm10, %v983_v16, %v230_v35  ;;  %v254_v26 = vand.u32 65535, %v938_v40  ;;  %v250_v9 = vsel %vm240_vm13, %v236_v37, 1326507024 }
  0x34   :  { %v1014_v1 = vadd.s32 %v119_v27, %v110_v36  ;;  %v247_v3 = vsel %vm239_vm11, %v230_v35, %v246_v0  ;;  %v142_v2 = vadd.s32 %v141_v63, %v132_v43  ;;  %v255_v10 = vshrl.u32 %v938_v40, 16 }
  0x35   :  { %v248_v5 = vsel %vm238_vm12, %v245_v46, %v247_v3  ;;  %v143_v12 = vmul.u32 %v928_v22, %v89_v62  ;;  %v251_v13 = vsel %vm239_vm11, %v233_v58, %v250_v9  ;;  %v221_v24 = vshrl.u32 %v857_v29, %v947_v51 }
  0x36   :  { %vm145_vm14 = vc.u32 %v1014_v1, %v1000_v60  ;;  %v278_v14 = vand.u32 65535, %v248_v5  ;;  %v146_v17 = vadd.s32 1, %v142_v2  ;;  %v252_v18 = vsel %vm238_vm12, %v249_v4, %v251_v13 }
  0x37   :  { %v279_v19 = vshrl.u32 %v248_v5, 16  ;;  %v256_v20 = vand.u32 65535, %v252_v18  ;;  %v257_v21 = vshrl.u32 %v252_v18, 16  ;;  %v242_v41 = vsel %vm240_vm13, %v230_v35, 2102212464 }
  0x38   :  { %v147_v23 = vsel %vm145_vm14, %v146_v17, %v142_v2  ;;  %v282_v22 = vmul.u32 %v278_v14, %v255_v10  ;;  %v280_v32 = vmul.u32 %v278_v14, %v254_v26  ;;  %v241_v43 = vsel %vm237_vm10, %v221_v24, %v981_v15 }
  0x39   :  { %v281_v25 = vmul.u32 %v279_v19, %v254_v26  ;;  %v148_v28 = vadd.s32 %v147_v23, %v143_v12  ;;  %v258_v30 = vmul.u32 %v256_v20, %v254_v26  ;;  %v259_v31 = vmul.u32 %v257_v21, %v254_v26 }
  0x3a   :  { %v260_v34 = vmul.u32 %v256_v20, %v255_v10  ;;  %v261_v42 = vmul.u32 %v257_v21, %v255_v10  ;;  %v283_v29 = vmul.u32 %v279_v19, %v255_v10  ;;  %v286_v51 = vshll.u32 %v282_v22, 16 }
  0x3b   :  { %v284_v36 = vshll.u32 %v281_v25, 16  ;;  %v149_v38 = vadd.s32 536870912, %v148_v28  ;;  %v262_v33 = vshll.u32 %v259_v31, 16  ;;  %v243_v49 = vsel %vm239_vm11, %v983_v16, %v242_v41 }
  0x3c   :  { %v264_v45 = vshll.u32 %v260_v34, 16  ;;  %v263_v15 = vshrl.u32 %v259_v31, 16  ;;  %v285_v55 = vshrl.u32 %v281_v25, 16  ;;  %v265_v59 = vshrl.u32 %v260_v34, 16 }
  0x3d   :  { %v1041_v48 = vshrl.u32 %v149_v38, 30  ;;  %vm266_vm15 = vc.u32 %v258_v30, %v262_v33  ;;  %v268_v39 = vadd.s32 %v262_v33, %v258_v30  ;;  %vm288_vm0 = vc.u32 %v280_v32, %v284_v36 }
  0x3e   :  { %v267_v50 = vsel %vm266_vm15, 1, %v863_v47  ;;  %v289_v44 = vsel %vm288_vm0, 1, %v863_v47  ;;  %v290_v52 = vadd.s32 %v284_v36, %v280_v32  ;;  %v287_v27 = vshrl.u32 %v282_v22, 16 }
  0x3f   :  { %v151_v53 = vshll.u32 %v1041_v48, 30  ;;  %v269_v54 = vadd.s32 %v267_v50, %v261_v42  ;;  %vm270_vm1 = vc.u32 %v268_v39, %v264_v45  ;;  %v291_v56 = vadd.s32 %v289_v44, %v283_v29 }
  0x40   :  { %v271_v35 = vsel %vm270_vm1, 1, %v863_v47  ;;  %vm292_vm2 = vc.u32 %v290_v52, %v286_v51  ;;  %v294_v46 = vadd.s32 %v290_v52, %v286_v51  ;;  %v244_v0 = vsel %vm238_vm12, %v241_v43, %v243_v49 }
  0x41   :  { %v152_v58 = vsub.s32 %v148_v28, %v151_v53  ;;  %v273_v61 = vadd.s32 %v271_v35, %v269_v54  ;;  %v293_v16 = vsel %vm292_vm2, 1, %v863_v47  ;;  %v298_v9 = vmul.u32 %v938_v40, %v244_v0 }
  0x42   :  { %v295_v37 = vadd.s32 %v293_v16, %v291_v56  ;;  %v144_v47 = vadd.s32 %v1000_v60, %v1014_v1  ;;  %v174_v34 = vsub.s32 4, %v1041_v48  ;;  %vm52_vm7 = vcmp.lt.s32.totalorder %v911_v6, 0 }
  0x43   :  { %vm153_vm3 = vcmp.lt.s32.totalorder %v152_v58, 0  ;;  %v154_v62 = vsub.s32 0, %v152_v58  ;;  %v274_v63 = vadd.s32 %v273_v61, %v263_v15  ;;  %vm51_vm8 = vcmp.le.f32.partialorder %v50_v8, 0.7853982 }
  0x44   :  { %v296_v3 = vadd.s32 %v295_v37, %v285_v55  ;;  %v175_v33 = vsel %vm52_vm7, %v174_v34, %v1041_v48  ;;  %vm207_vm11 = vcmp.lt.s32.totalorder %v913_v7, 0  ;;  %vm1068_vm13 = vcmp.le.f32.partialorder %v205_v11, 0.7853982 }
  0x45   :  { %v155_v4 = vsel %vm153_vm3, %v154_v62, %v152_v58  ;;  %v275_v26 = vadd.s32 %v274_v63, %v265_v59  ;;  %v177_v39 = vsel %vm51_vm8, 0, %v175_v33  ;;  %vm193_vm2 = vweird.f32 %v911_v6 }
  0x46   :  { %v156_v2 = vclz %v155_v4  ;;  %v297_v5 = vadd.s32 %v296_v3, %v287_v27  ;;  %v194_v55 = vadd.s32 3, %v177_v39 }
  0x47   :  { %vm300_vm4 = vc.u32 %v275_v26, %v294_v46  ;;  %v299_v51 = vadd.s32 %v294_v46, %v275_v26  ;;  %v506_v46 = vand.u32 3, %v177_v39 }
  0x48   :  { %v727_v10 = vadd.s32 4294967294, %v156_v2  ;;  %v301_v12 = vadd.s32 1, %v297_v5  ;;  %v195_v37 = vand.u32 3, %v194_v55 }
  0x49   :  { %vm511_vm12 = vcmp.eq.s32.totalorder %v506_v46, 2  ;;  %vm508_vm0 = vcmp.eq.s32.totalorder %v506_v46, 0  ;;  %vm507_vm1 = vcmp.lt.s32.totalorder %v506_v46, 2 }
  0x4a   :  { %vm728_vm5 = vcmp.lt.s32.totalorder %v727_v10, 0  ;;  %v302_v13 = vsel %vm300_vm4, %v301_v12, %v297_v5  ;;  %vm200_vm10 = vcmp.eq.s32.totalorder %v195_v37, 2  ;;  %vm196_vm14 = vcmp.lt.s32.totalorder %v195_v37, 2 }
  0x4b   :  { %v159_v14 = vsel %vm728_vm5, 0, %v727_v10  ;;  %v303_v17 = vadd.s32 %v302_v13, %v298_v9  ;;  %vm197_vm15 = vcmp.eq.s32.totalorder %v195_v37, 0 }
  0x4c   :  { %v160_v18 = vsub.s32 32, %v159_v14  ;;  %v161_v57 = vshll.u32 %v152_v58, %v159_v14  ;;  %v164_v19 = vsub.s32 4294967266, %v159_v14 }
  0x4d   :  { %v304_v20 = vadd.s32 536870912, %v303_v17 }
  0x4e   :  { %v162_v21 = vshrl.u32 %v144_v47, %v160_v18  ;;  %v165_v23 = vadd.s32 127, %v164_v19 }
  0x4f   :  { %v1056_v24 = vshrl.u32 %v304_v20, 30 }
  0x50   :  { %v163_v25 = vor.u32 %v162_v21, %v161_v57  ;;  %v166_v40 = vshll.u32 %v165_v23, 23 }
  0x51   :  { %v306_v22 = vshll.u32 %v1056_v24, 30  ;;  %v329_v47 = vsub.s32 4, %v1056_v24 }
  0x52   :  { %v167_v28 = vor.u32 4788187, %v166_v40  ;;  %v170_v30 = vcvt.s32.f32 %v163_v25 }
  0x53   :  { %v307_v31 = vsub.s32 %v303_v17, %v306_v22  ;;  %v330_v11 = vsel %vm207_vm11, %v329_v47, %v1056_v24 }
  0x54   :  { %v168_v60 = vand.u32 2147483647, %v167_v28 }
  0x55   :  { %vm308_vm6 = vcmp.lt.s32.totalorder %v307_v31, 0  ;;  %v309_v1 = vsub.s32 0, %v307_v31 }
  0x56   :  { %v171_v32 = vmul.f32 %v170_v30, %v168_v60 }
  0x57   :  { %v310_v36 = vsel %vm308_vm6, %v309_v1, %v307_v31 }
  0x58   :  { %v172_v38 = vxor.u32 2147483648, %v171_v32  ;;  %v311_v41 = vclz %v310_v36 }
  0x5a   :  { %v173_v42 = vsel %vm52_vm7, %v172_v38, %v171_v32  ;;  %v730_v43 = vadd.s32 4294967294, %v311_v41 }
  0x5b   :  { %v176_v45 = vsel %vm51_vm8, %v911_v6, %v173_v42  ;;  %v332_v6 = vsel %vm1068_vm13, 0, %v330_v11 }
  0x5c   :  { %v178_v29 = vmul.f32 %v176_v45, %v176_v45  ;;  %vm731_vm9 = vcmp.lt.s32.totalorder %v730_v43, 0  ;;  %v349_v24 = vadd.s32 3, %v332_v6  ;;  %v660_v42 = vand.u32 3, %v332_v6 }
  0x5d   :  { %v314_v49 = vsel %vm731_vm9, 0, %v730_v43  ;;  %vm348_vm9 = vweird.f32 %v913_v7 }
  0x5e   :  { %v179_v50 = vmul.f32 -0.001358992, %v178_v29  ;;  %v186_v44 = vmul.f32 -0.00019511016, %v178_v29  ;;  %v315_v52 = vsub.s32 32, %v314_v49  ;;  %v316_v53 = vshll.u32 %v307_v31, %v314_v49 }
  0x5f   :  { %v319_v15 = vsub.s32 4294967266, %v314_v49  ;;  %v350_v41 = vand.u32 3, %v349_v24  ;;  %vm665_vm4 = vcmp.eq.s32.totalorder %v660_v42, 2  ;;  %vm662_vm7 = vcmp.eq.s32.totalorder %v660_v42, 0 }
  0x60   :  { %v180_v54 = vadd.f32 0.041655596, %v179_v50  ;;  %v187_v8 = vadd.f32 0.008332121, %v186_v44  ;;  %v317_v35 = vshrl.u32 %v299_v51, %v315_v52  ;;  %vm661_vm8 = vcmp.lt.s32.totalorder %v660_v42, 2 }
  0x61   :  { %v320_v56 = vadd.s32 127, %v319_v15  ;;  %vm355_vm3 = vcmp.eq.s32.totalorder %v350_v41, 2  ;;  %vm351_vm5 = vcmp.lt.s32.totalorder %v350_v41, 2  ;;  %vm352_vm6 = vcmp.eq.s32.totalorder %v350_v41, 0 }
  0x62   :  { %v181_v58 = vmul.f32 %v180_v54, %v178_v29  ;;  %v188_v48 = vmul.f32 %v187_v8, %v178_v29  ;;  %v318_v59 = vor.u32 %v317_v35, %v316_v53 }
  0x63   :  { %v321_v61 = vshll.u32 %v320_v56, 23 }
  0x64   :  { %v182_v16 = vadd.f32 -0.4999988, %v181_v58  ;;  %v189_v27 = vadd.f32 -0.16666654, %v188_v48  ;;  %v325_v63 = vcvt.s32.f32 %v318_v59 }
  0x65   :  { %v322_v62 = vor.u32 4788187, %v321_v61 }
  0x66   :  { %v183_v0 = vmul.f32 %v182_v16, %v178_v29  ;;  %v190_v3 = vmul.f32 %v189_v27, %v178_v29 }
  0x67   :  { %v323_v4 = vand.u32 2147483647, %v322_v62 }
  0x68   :  { %v184_v26 = vadd.f32 1.0, %v183_v0  ;;  %v191_v2 = vadd.f32 1.0, %v190_v3 }
  0x69   :  { %v326_v5 = vmul.f32 %v325_v63, %v323_v4 }
  0x6a   :  { %v192_v9 = vmul.f32 %v191_v2, %v176_v45  ;;  %v201_v10 = vxor.u32 2147483648, %v184_v26 }
  0x6b   :  { %v327_v13 = vxor.u32 2147483648, %v326_v5 }
  0x6c   :  { %v198_v14 = vxor.u32 2147483648, %v192_v9  ;;  %v202_v17 = vsel %vm200_vm10, %v201_v10, %v192_v9  ;;  %v513_v18 = vsel %vm511_vm12, %v201_v10, %v192_v9 }
  0x6d   :  { %v328_v57 = vsel %vm207_vm11, %v327_v13, %v326_v5 }
  0x6e   :  { %v199_v19 = vsel %vm197_vm15, %v184_v26, %v198_v14  ;;  %v331_v20 = vsel %vm1068_vm13, %v913_v7, %v328_v57  ;;  %v510_v21 = vsel %vm508_vm0, %v184_v26, %v198_v14 }
  0x6f   :  { %v203_v23 = vsel %vm196_vm14, %v199_v19, %v202_v17  ;;  %v333_v25 = vmul.f32 %v331_v20, %v331_v20  ;;  %v514_v40 = vsel %vm507_vm1, %v510_v21, %v513_v18 }
  0x70   :  { %v204_v22 = vsel %vm193_vm2, nan, %v203_v23  ;;  %v515_v28 = vsel %vm193_vm2, nan, %v514_v40 }
  0x71   :  { %360 = vst [vmem:[#allocation8] sm:$0xff] %v204_v22  ;;  %v334_v30 = vmul.f32 -0.001358992, %v333_v25  ;;  %v341_v31 = vmul.f32 -0.00019511016, %v333_v25 }
  0x72   :  { %670 = vst [vmem:[#allocation10] sm:$0xff] %v515_v28 }
  0x73   :  { %v335_v60 = vadd.f32 0.041655596, %v334_v30  ;;  %v342_v1 = vadd.f32 0.008332121, %v341_v31 }
  0x75   :  { %v336_v32 = vmul.f32 %v335_v60, %v333_v25  ;;  %v343_v34 = vmul.f32 %v342_v1, %v333_v25 }
  0x77   :  { %v337_v36 = vadd.f32 -0.4999988, %v336_v32  ;;  %v344_v38 = vadd.f32 -0.16666654, %v343_v34 }
  0x79   :  { %v338_v33 = vmul.f32 %v337_v36, %v333_v25  ;;  %v345_v43 = vmul.f32 %v344_v38, %v333_v25 }
  0x7b   :  { %v339_v45 = vadd.f32 1.0, %v338_v33  ;;  %v346_v29 = vadd.f32 1.0, %v345_v43 }
  0x7d   :  { %v347_v51 = vmul.f32 %v346_v29, %v331_v20  ;;  %v356_v39 = vxor.u32 2147483648, %v339_v45 }
  0x7f   :  { %v353_v49 = vxor.u32 2147483648, %v347_v51  ;;  %v357_v50 = vsel %vm355_vm3, %v356_v39, %v347_v51  ;;  %v667_v44 = vsel %vm665_vm4, %v356_v39, %v347_v51 }
  0x81   :  { %v354_v52 = vsel %vm352_vm6, %v339_v45, %v353_v49  ;;  %v664_v53 = vsel %vm662_vm7, %v339_v45, %v353_v49 }
  0x82   :  { %v358_v15 = vsel %vm351_vm5, %v354_v52, %v357_v50  ;;  %v668_v54 = vsel %vm661_vm8, %v664_v53, %v667_v44 }
  0x83   :  { %v359_v8 = vsel %vm348_vm9, nan, %v358_v15  ;;  %v669_v35 = vsel %vm348_vm9, nan, %v668_v54 }
  0x84   :  { %361 = vst [vmem:[#allocation8 + $0x8] sm:$0xff] %v359_v8 }
  0x85   :  { %671 = vst [vmem:[#allocation10 + $0x8] sm:$0xff] %v669_v35  ;;  %697 = dma.vmem_to_hbm [thread:$0]  %s690_s1, 256, %s692_s10, [#allocation9], %s854_s23, %s854_s23, %s855_s24  }
  0x86   :  { %710 = dma.vmem_to_hbm [thread:$0]  %s703_s12, 256, %s705_s15, [#allocation9], %s854_s23, %s854_s23, %s855_s24  }
  0x87   :  { %849 = dma.done.wait [#allocation6], 256  }
  0x88   :  { %850 = vsyncadd [#allocation6], 4294967040 }
  0x89   :  { %851 = dma.done.wait [#allocation9], 512  }
  0x8a   :  { %852 = vsyncadd [#allocation9], 4294966784 }
  0x8b   :  { %723 = vsyncpa [#allocation5], 1 }
  0x8c   :  { %724 = vsyncpa [#allocation6], 1 }
  0x8d   :  { %725 = vsyncpa [#allocation9], 1 }

</bundles_post_ra>
